<compile_context>
chip_gen: v7x
topology: tpu7x:2x2x1
jax: 0.10.0
libtpu: 0.0.40
codegen_flags: <defaults>
</compile_context>

<pallas_src>
import jax
import jax.numpy as jnp
from jax.experimental import pallas as pl
from jax.experimental.pallas import tpu as pltpu


def _pos_enc_kernel(pe_ref, x_ref, o_ref):
    # pe_ref: (1, enc_cols) scaled positional encoding, broadcasts over the
    # tile_b batch rows of x_ref/o_ref: pure streaming read-modify-write.
    o_ref[...] = x_ref[...] + pe_ref[...]


def _round_up(n, m):
    return ((n + m - 1) // m) * m


def _positional_encoding_2d_impl(x):
    """x: (B, C, H, W) float32 -> same shape, x + 0.1 * pos_encoding_expanded."""
    b, c, h, w = x.shape
    assert c >= 2, "PositionalEncoding2D requires at least 2 channels"
    hw = h * w
    row_len = c * hw

    # Encoded slab = channels 0:2 = first 2*H*W columns of each flattened row.
    # Round the prefix up to a 128-lane boundary (pe is zero past 2*H*W, so the
    # extra columns are a no-op RMW); never exceed the full row.
    enc_cols = min(row_len, _round_up(2 * hw, 128))

    xf = x.reshape(b, row_len)

    # Precompute 0.1 * positional encoding once (tiny (1, enc_cols) vector).
    # Integer // and % avoid the f32 floor/divide mis-rounding hazard.
    idx = jnp.arange(enc_cols, dtype=jnp.int32)
    row = idx // w
    col = idx % w
    y_pe = (row.astype(jnp.float32) / h) * 2.0 - 1.0
    x_pe = (col.astype(jnp.float32) / w) * 2.0 - 1.0
    pe = jnp.where(idx < hw, y_pe, jnp.where(idx < 2 * hw, x_pe, 0.0))
    pe = (0.1 * pe).astype(xf.dtype).reshape(1, enc_cols)

    # Batch tile: must divide B, be sublane-legal (multiple of 8 or == B), and
    # keep one block <= 4 MiB (safe for v7x's 64 MiB VMEM; v5e/v6e have more
    # headroom). Prefer >= 2 grid steps when a legal tile allows it so the
    # "parallel" axis can shard across both v7x TensorCores.
    max_block_bytes = 4 * 1024 * 1024
    bytes_per_row = enc_cols * xf.dtype.itemsize
    candidates = [d for d in range(1, b + 1)
                  if b % d == 0 and d * bytes_per_row <= max_block_bytes]
    legal = [d for d in candidates if d == b or d % 8 == 0]
    pool = legal or candidates or [1]
    multi = [d for d in pool if b // d >= 2]
    tile_b = max(multi) if multi else max(pool)

    out = pl.pallas_call(
        _pos_enc_kernel,
        out_shape=jax.ShapeDtypeStruct(xf.shape, xf.dtype),
        grid_spec=pltpu.PrefetchScalarGridSpec(
            num_scalar_prefetch=0,
            grid=(b // tile_b,),
            in_specs=[
                pl.BlockSpec((1, enc_cols), lambda i: (0, 0)),        # pe vec
                pl.BlockSpec((tile_b, enc_cols), lambda i: (i, 0)),   # x prefix
            ],
            out_specs=pl.BlockSpec((tile_b, enc_cols), lambda i: (i, 0)),
        ),
        # Output aliases x: columns (channels >= 2) the grid never visits keep
        # x's contents. With the caller donating x this is a true in-place op.
        input_output_aliases={1: 0},
        compiler_params=pltpu.CompilerParams(
            dimension_semantics=("parallel",),
            vmem_limit_bytes=32 * 1024 * 1024,
        ),
    )(pe, xf)
    return out.reshape(b, c, h, w)


# Donate x so the aliasing is real (no hidden full-tensor copy). Callers must
# not reuse x after this call.
positional_encoding_2d = jax.jit(_positional_encoding_2d_impl, donate_argnums=0)


def _reference(x):
    b, c, h, w = x.shape
    y_pos = jnp.arange(h, dtype=jnp.float32)[:, None] / h * 2 - 1
    y_pos = jnp.broadcast_to(y_pos, (h, w))
    x_pos = jnp.arange(w, dtype=jnp.float32)[None, :] / w * 2 - 1
    x_pos = jnp.broadcast_to(x_pos, (h, w))
    pe = jnp.stack([y_pos, x_pos], axis=0)                        # (2, H, W)
    pe_exp = jnp.zeros((b, c, h, w), jnp.float32).at[:, 0:2, :, :].set(pe[None])
    return x + 0.1 * pe_exp


if __name__ == "__main__":
    key = jax.random.PRNGKey(0)
    k1, k2 = jax.random.split(key)

    # Primary case (module-consistent small shape).
    B, C, H, W = 2, 4, 16, 16
    x = jax.random.normal(k1, (B, C, H, W), dtype=jnp.float32)
    ref = _reference(x)                       # compute before: x is donated
    out = jax.block_until_ready(positional_encoding_2d(x))
    assert out.shape == (B, C, H, W)
    assert jnp.allclose(out, ref, atol=1e-6), "mismatch vs reference"

    # Second case: C > 2 pass-through channels with B > tile_b (multi-step
    # grid) to exercise the aliased, never-visited output blocks.
    x2 = jax.random.normal(k2, (16, 3, 8, 8), dtype=jnp.float32)
    ref2 = _reference(x2)
    out2 = jax.block_until_ready(positional_encoding_2d(x2))
    assert jnp.allclose(out2, ref2, atol=1e-6), "mismatch vs reference (case 2)"

    print("KERNEL_OK")
</pallas_src>

<mosaic_0001>
module attributes {stable_mosaic.version = 11 : i64} {
  func.func @_pos_enc_kernel(%arg0: i32, %arg1: memref<1x512xf32, #tpu.memory_space<vmem>>, %arg2: memref<2x512xf32, #tpu.memory_space<vmem>>, %arg3: memref<2x512xf32, #tpu.memory_space<vmem>>) attributes {dimension_semantics = [#tpu.dimension_semantics<parallel>], iteration_bounds = array<i64: 1>, scalar_prefetch = 0 : i64, scratch_operands = 0 : i64, tpu.core_type = #tpu.core_type<tc>, window_params = [{pipeline_mode = #tpu.pipeline_mode<synchronous>, transform_indices = @transform_0, window_bounds = array<i64: 1, 512>}, {transform_indices = @transform_1, window_bounds = array<i64: 2, 512>}, {transform_indices = @transform_2, window_bounds = array<i64: 2, 512>}]} {
    %c0 = arith.constant 0 : index
    %c0_0 = arith.constant 0 : index
    %0 = vector.load %arg2[%c0, %c0_0] : memref<2x512xf32, #tpu.memory_space<vmem>>, vector<2x512xf32>
    %c0_1 = arith.constant 0 : index
    %c0_2 = arith.constant 0 : index
    %1 = vector.load %arg1[%c0_1, %c0_2] : memref<1x512xf32, #tpu.memory_space<vmem>>, vector<1x512xf32>
    %2 = vector.broadcast %1 : vector<1x512xf32> to vector<2x512xf32>
    %3 = arith.addf %0, %2 : vector<2x512xf32>
    %c0_3 = arith.constant 0 : index
    %c0_4 = arith.constant 0 : index
    %4 = vector.load %arg3[%c0_3, %c0_4] : memref<2x512xf32, #tpu.memory_space<vmem>>, vector<2x512xf32>
    tpu.vector_store %arg3[%c0_3, %c0_4], %3 {strides = array<i32>} : memref<2x512xf32, #tpu.memory_space<vmem>>, vector<2x512xf32>,
    return
  }
  func.func @transform_0(%arg0: i32) -> (i32, i32) {
    %c0_i32 = arith.constant 0 : i32
    %c0_i32_0 = arith.constant 0 : i32
    %c0_i32_1 = arith.constant 0 : i32
    return %c0_i32, %c0_i32_0 : i32, i32
  }
  func.func @transform_1(%arg0: i32) -> (i32, i32) {
    %c0_i32 = arith.constant 0 : i32
    %c0_i32_0 = arith.constant 0 : i32
    return %arg0, %c0_i32 : i32, i32
  }
  func.func @transform_2(%arg0: i32) -> (i32, i32) {
    %c0_i32 = arith.constant 0 : i32
    %c0_i32_0 = arith.constant 0 : i32
    return %arg0, %c0_i32 : i32, i32
  }
}

</mosaic_0001>

<bundles_post_ra>
// kernel: _positional_encoding_2d_impl.1
= control target key start
LH: loop header
LB: loop body
LE: loop exit
PB: predicated region body
PF: predicated region fallthrough
CT: control target
= control target key end

     0   :  { %v14_v0 = vlaneseq  ;;  %v55_v1 = vmov 1983009808   ;;  %s80_s0 = inlined_call_operand.vmem [shape: f32[1,512], index: 0, kind: input, shape index: {}]   ;;  %s81_s1 = inlined_call_operand.vmem [shape: f32[2,1024], index: 1, kind: input, shape index: {}, may-alias: {1,2}]   ;;  %s82_s2 = inlined_call_operand.vmem [shape: f32[2,1024], index: 2, kind: output, shape index: {}, may-alias: {1,2}]  }
   0x1   :  { %v33_v2 = vunpack.c.l.s4 %v55_v1  ;;  %v12_v4 = vld [vmem:[%s80_s0] sm:$0xf] }
   0x2   :  { %v15_v3 = vshrl.u32 %v14_v0, 7  ;;  %v11_v19 = vld [vmem:[%s81_s1] sm:$0xff] }
   0x3   :  { %v34_v5 = vunpack.c.0.s8 %v33_v2 }
   0x4   :  { %v16_v6 = vsub.s32 0, %v15_v3  ;;  %v20_v7 = vsub.s32 1, %v15_v3  ;;  %v24_v8 = vsub.s32 2, %v15_v3  ;;  %v28_v9 = vsub.s32 3, %v15_v3 }
   0x5   :  { %v37_v10 = vsub.s32 %v34_v5, %v15_v3 }
   0x6   :  { %v17_v11 = vrot.slane %v12_v4, %v16_v6  ;;  %v21_v12 = vrot.slane %v12_v4, %v20_v7  ;;  %v25_v13 = vrot.slane %v12_v4, %v24_v8  ;;  %v29_v14 = vrot.slane %v12_v4, %v28_v9 }
   0x8   :  { %v30_v15 = vcombine.low %v17_v11, %v21_v12  ;;  %v31_v16 = vcombine.low %v25_v13, %v29_v14 }
   0xa   :  { %v38_v17 = vrot.slane %v30_v15, %v37_v10  ;;  %v45_v18 = vrot.slane %v31_v16, %v37_v10 }
   0xc   :  { %v46_v20 = vcombine.low %v38_v17, %v45_v18 }
   0xe   :  { %v48_v21 = vadd.f32 %v46_v20, %v11_v19 }
  0x10   :  { %49 = vst [vmem:[%s82_s2] sm:$0xff] %v48_v21 }

</bundles_post_ra>
